<compile_context>
chip_gen: v7x
topology: tpu7x:2x2x1
jax: 0.10.0
libtpu: 0.0.40
codegen_flags: <defaults>
</compile_context>

<pallas_src>
import jax
import jax.numpy as jnp
from jax.experimental import pallas as pl
from jax.experimental.pallas import tpu as pltpu

LANE = 128


def _round_up(n, m):
    return ((n + m - 1) // m) * m


def _cdiv(a, b):
    return -(-a // b)


def _sigmoid_linear_kernel(x_ref, w_ref, b_ref, o_ref):
    """o = sigmoid(x @ w + b). Shared by the plain and packed layouts."""
    z = jnp.dot(x_ref[...], w_ref[...], preferred_element_type=jnp.float32)
    z = z + b_ref[...]  # bias broadcast over rows
    # sigmoid(z) == 0.5 * tanh(z/2) + 0.5 : one EUP op, no approx reciprocal.
    o_ref[...] = (0.5 * jnp.tanh(0.5 * z) + 0.5).astype(o_ref.dtype)


def _pick_tile(rows, max_tile, min_tile):
    """Batch-tile heuristic: aim for >=4 tiles (so v7x's two TCs each get >=2
    under the "parallel" axis) without dropping below the per-grid-step
    overhead amortization floor or exceeding the VMEM-safe max tile."""
    tb = max(min_tile, _round_up(_cdiv(rows, 4), 8))
    return min(tb, max_tile, _round_up(rows, 8))


def _single_block(x, w, b2):
    """Whole problem as one grid-less VMEM block: no grid / pipeline overhead."""
    # TODO(synk): at this scale a plain jitted jax.nn.sigmoid(x @ w + b) is
    # launch-overhead competitive with any custom kernel.
    B = x.shape[0]
    O = w.shape[1]
    return pl.pallas_call(
        _sigmoid_linear_kernel,
        out_shape=jax.ShapeDtypeStruct((B, O), jnp.float32),
    )(x, w, b2)


def _batch_tiled(x, w, b2, tb):
    """Fallback tiled path: ragged cdiv grid over the batch, weights + bias
    VMEM-resident, output kept (B, O) in HBM (no lane padding)."""
    B, F = x.shape
    O = w.shape[1]
    return pl.pallas_call(
        _sigmoid_linear_kernel,
        out_shape=jax.ShapeDtypeStruct((B, O), jnp.float32),
        grid=(_cdiv(B, tb),),
        in_specs=[
            pl.BlockSpec((tb, F), lambda i: (i, 0)),   # streamed activations
            pl.BlockSpec((F, O), lambda i: (0, 0)),    # resident weights
            pl.BlockSpec((1, O), lambda i: (0, 0)),    # resident bias
        ],
        out_specs=pl.BlockSpec((tb, O), lambda i: (i, 0)),
        compiler_params=pltpu.CompilerParams(
            dimension_semantics=("parallel",)),        # split tiles across TCs
    )(x, w, b2)


def _packed_tiled(x, w, b, tb_p, pack):
    """Lane-dense packed path: `pack` samples share one 128-lane row.
    x (B, F) -> (B/pack, F*pack)   (free: identical bytes, row-major)
    weight   -> block-diagonal (F*pack, O*pack), VMEM-resident (~512 KiB)
    output   (B/pack, O*pack) -> reshape back to (B, O) (free).
    Input and output DMAs are fully contiguous and lane-dense; the extra zero
    MACs on the MXU are free because the kernel is memory bound."""
    B, F = x.shape
    O = w.shape[1]
    Bp = B // pack
    xp = x.reshape(Bp, F * pack)
    w_bd = jnp.kron(jnp.eye(pack, dtype=w.dtype), w)   # (F*pack, O*pack) block-diag
    b_t = jnp.tile(b.reshape(1, O), (1, pack))         # (1, O*pack)

    out_p = pl.pallas_call(
        _sigmoid_linear_kernel,
        out_shape=jax.ShapeDtypeStruct((Bp, O * pack), jnp.float32),
        grid=(_cdiv(Bp, tb_p),),
        in_specs=[
            pl.BlockSpec((tb_p, F * pack), lambda i: (i, 0)),      # packed x
            pl.BlockSpec((F * pack, O * pack), lambda i: (0, 0)),  # resident W_bd
            pl.BlockSpec((1, O * pack), lambda i: (0, 0)),         # resident bias
        ],
        out_specs=pl.BlockSpec((tb_p, O * pack), lambda i: (i, 0)),
        compiler_params=pltpu.CompilerParams(
            dimension_semantics=("parallel",)),
    )(xp, w_bd, b_t)
    return out_p.reshape(B, O)


def logistic_regression(x, w, b, *, batch_tile=4096, packed_tile=1024,
                        small_batch=1024):
    """x: (B, F) f32, w: (F, O) f32, b: (O,) f32 -> sigmoid(x @ w + b), (B, O)."""
    B, F = x.shape
    O = w.shape[1]
    x = x.astype(jnp.float32)
    w = w.astype(jnp.float32)
    b = b.astype(jnp.float32)
    b2 = b.reshape(1, O)

    if B <= small_batch:
        return _single_block(x, w, b2)

    # Preferred: lane-dense packed layout (pack = 128 // O samples per row).
    pack = LANE // O if (O <= LANE and LANE % O == 0) else 1
    if pack > 1 and B % pack == 0:
        tb_p = _pick_tile(B // pack, packed_tile, 128)
        # VMEM @ tb_p=1024: 2*(4 MiB x + 0.5 MiB out) + 0.5 MiB W_bd ~= 10 MiB,
        # inside the scoped-VMEM defaults of v5e (16 MiB) / v6e / v7x (32 MiB).
        return _packed_tiled(x, w, b, tb_p, pack)

    # Fallback: plain batch-tiled path with a ragged cdiv grid (no wrapper-side
    # concatenate of x, no output lane padding).
    tb = _pick_tile(B, batch_tile, 512)
    return _batch_tiled(x, w, b2, tb)


if __name__ == "__main__":
    key = jax.random.PRNGKey(0)
    kx1, kw, kb, kx2, kx3 = jax.random.split(key, 5)

    in_features = 32   # synthetic stand-in for len(symps_dict) (== 0, degenerate)
    out_features = 4   # as in nn.Linear(len(symps_dict), 4)

    # PyTorch-style uniform(-1/sqrt(F), 1/sqrt(F)) init.
    bound = 1.0 / jnp.sqrt(jnp.float32(in_features))
    w = jax.random.uniform(kw, (in_features, out_features),
                           minval=-bound, maxval=bound, dtype=jnp.float32)
    b = jax.random.uniform(kb, (out_features,),
                           minval=-bound, maxval=bound, dtype=jnp.float32)

    def ref(xv):
        return jax.nn.sigmoid(xv @ w + b)

    # --- small batch: grid-less single-block path ---
    x1 = jax.random.normal(kx1, (8, in_features), dtype=jnp.float32)
    y1 = jax.block_until_ready(logistic_regression(x1, w, b))
    assert y1.shape == (8, out_features)
    assert jnp.allclose(y1, ref(x1), atol=5e-3, rtol=5e-3), \
        float(jnp.max(jnp.abs(y1 - ref(x1))))

    # --- larger batch, multiple of 32: lane-dense packed path ---
    x2 = jax.random.normal(kx2, (4096, in_features), dtype=jnp.float32)
    y2 = jax.block_until_ready(logistic_regression(x2, w, b))
    assert y2.shape == (4096, out_features)
    assert jnp.allclose(y2, ref(x2), atol=5e-3, rtol=5e-3), \
        float(jnp.max(jnp.abs(y2 - ref(x2))))

    # --- ragged batch (not a multiple of 32): cdiv-grid tiled fallback ---
    x3 = jax.random.normal(kx3, (1500, in_features), dtype=jnp.float32)
    y3 = jax.block_until_ready(logistic_regression(x3, w, b))
    assert y3.shape == (1500, out_features)
    assert jnp.allclose(y3, ref(x3), atol=5e-3, rtol=5e-3), \
        float(jnp.max(jnp.abs(y3 - ref(x3))))

    print("KERNEL_OK")
</pallas_src>

<mosaic_0001>
module attributes {stable_mosaic.version = 11 : i64} {
  func.func @_sigmoid_linear_kernel(%arg0: memref<8x32xf32, #tpu.memory_space<vmem>>, %arg1: memref<32x4xf32, #tpu.memory_space<vmem>>, %arg2: memref<1x4xf32, #tpu.memory_space<vmem>>, %arg3: memref<8x4xf32, #tpu.memory_space<vmem>>) attributes {dimension_semantics = [], scalar_prefetch = 0 : i64, scratch_operands = 0 : i64, tpu.core_type = #tpu.core_type<tc>} {
    %c0 = arith.constant 0 : index
    %c0_0 = arith.constant 0 : index
    %0 = vector.load %arg0[%c0, %c0_0] : memref<8x32xf32, #tpu.memory_space<vmem>>, vector<8x32xf32>
    %c0_1 = arith.constant 0 : index
    %c0_2 = arith.constant 0 : index
    %1 = vector.load %arg1[%c0_1, %c0_2] : memref<32x4xf32, #tpu.memory_space<vmem>>, vector<32x4xf32>
    %cst = arith.constant dense<0.000000e+00> : vector<8x4xf32>
    %2 = tpu.matmul %0, %1, %cst {dimension_numbers = #tpu.dot_dimension_numbers<[1], [0], [0], [1], [0, 0, 1, 1], [], []>} : vector<8x32xf32>, vector<32x4xf32>, vector<8x4xf32> -> vector<8x4xf32>
    %c0_3 = arith.constant 0 : index
    %c0_4 = arith.constant 0 : index
    %3 = vector.load %arg2[%c0_3, %c0_4] : memref<1x4xf32, #tpu.memory_space<vmem>>, vector<1x4xf32>
    %4 = vector.broadcast %3 : vector<1x4xf32> to vector<8x4xf32>
    %5 = arith.addf %2, %4 : vector<8x4xf32>
    %cst_5 = arith.constant 5.000000e-01 : f32
    %6 = vector.broadcast %cst_5 : f32 to vector<8x4xf32>
    %7 = arith.mulf %6, %5 : vector<8x4xf32>
    %8 = math.tanh %7 : vector<8x4xf32>
    %cst_6 = arith.constant 5.000000e-01 : f32
    %9 = vector.broadcast %cst_6 : f32 to vector<8x4xf32>
    %10 = arith.mulf %9, %8 : vector<8x4xf32>
    %cst_7 = arith.constant 5.000000e-01 : f32
    %11 = vector.broadcast %cst_7 : f32 to vector<8x4xf32>
    %12 = arith.addf %10, %11 : vector<8x4xf32>
    %c0_8 = arith.constant 0 : index
    %c0_9 = arith.constant 0 : index
    %13 = vector.load %arg3[%c0_8, %c0_9] : memref<8x4xf32, #tpu.memory_space<vmem>>, vector<8x4xf32>
    tpu.vector_store %arg3[%c0_8, %c0_9], %12 {strides = array<i32>} : memref<8x4xf32, #tpu.memory_space<vmem>>, vector<8x4xf32>,
    return
  }
}

</mosaic_0001>

<bundles_post_ra>
// kernel: tpu_custom_call.1
= control target key start
LH: loop header
LB: loop body
LE: loop exit
PB: predicated region body
PF: predicated region fallthrough
CT: control target
= control target key end

     0   :  { %v139_v0 = vmov 0.0|0.0   ;;  %vm140_vm0 = vmmov 0   ;;  %v141_v4 = vmov 0.0   ;;  %vm26_vm1 = vcmask 261120   ;;  %s183_s1 = inlined_call_operand.vmem [shape: f32[32,4], index: 1, kind: input, shape index: {}]   ;;  %s184_s0 = inlined_call_operand.vmem [shape: f32[8,32], index: 0, kind: input, shape index: {}]   ;;  %s185_s2 = inlined_call_operand.vmem [shape: f32[1,4], index: 2, kind: input, shape index: {}]   ;;  %s186_s3 = inlined_call_operand.vmem [shape: f32[8,4], index: 3, kind: output, shape index: {}]  }
   0x1   :  { %128 = vmatprep.subr.bf16.mxu0 %v139_v0  ;;  %v15_v1 = vld [vmem:[%s183_s1] sm:$0xff]  ;;  %v16_v2 = vld [vmem:[%s183_s1 + $0x8] sm:$0xff]  ;;  %v17_v3 = vld [vmem:[%s183_s1 + $0x10] sm:$0xff]  ;;  %125 = vmatprep.mubr.msk.f32.mxu0 %vm140_vm0, %v141_v4  ;;  %vm104_vm2 = vcmask 31744  }
   0x2   :  { %v129_v5 = vpack.c.bf16 %v16_v2, %v15_v1  ;;  %v18_v6 = vld [vmem:[%s183_s1 + $0x18] sm:$0xff]  ;;  %v14_v8 = vld [vmem:[%s184_s0] sm:$0xff] }
   0x3   :  { %v132_v7 = vpack.c.bf16 %v18_v6, %v17_v3  ;;  %v110_v9 = vld [vmem:[%s185_s2] ss:$0 sm:$0xff] }
   0x4   :  { %130 = vmatpush3.bf16.msra.mxu0 %v129_v5 }
   0x5   :  { %131 = vmatprep.subr.bf16.mxu0 %v139_v0 }
   0x8   :  { %133 = vmatpush3.bf16.msra.mxu0 %v132_v7 }
   0xb   :  { %126 = vmatmul.mubr.msk.f32.vlgmr.msra.gmra.mrb[0].mxu0 %vm26_vm1, %v14_v8 }
  0xde   :  { %v96_v10 = vpop.f32.mrb[0].mxu0 }
  0xdf   :  { %v97_v11 = vadd.f32 %v110_v9, %v96_v10  ;;  %v127_v12 = vpop.f32.mrb[1].mxu0 }
  0xe1   :  { %v100_v13 = vmul.f32 0.5, %v97_v11 }
  0xe3   :  { %137 = vtanh.f32 %v100_v13 }
  0xed   :  { %v138_v14 = vpop.eup %137 }
  0xee   :  { %v102_v15 = vmul.f32 0.5, %v138_v14 }
  0xf0   :  { %v103_v16 = vadd.f32 0.5, %v102_v15 }
  0xf2   :  { %105 = vst.msk [vmem:[%s186_s3] sm:$0xff] %vm104_vm2, %v103_v16 }

</bundles_post_ra>
